<compile_context>
chip_gen: v7x
topology: tpu7x:2x2x1
jax: 0.10.0
libtpu: 0.0.40
codegen_flags: <defaults>
</compile_context>

<pallas_src>
import functools

import numpy as np
import jax
import jax.numpy as jnp
from jax.experimental import pallas as pl
from jax.experimental.pallas import tpu as pltpu


def _get_vmem_limit():
    cap = 128 * 1024 * 1024
    try:
        info = pltpu.get_tpu_info()
        cap = int(getattr(info, "vmem_capacity_bytes", cap))
    except Exception:
        pass
    return int(max(16 * 1024 * 1024, min(cap // 2, 64 * 1024 * 1024)))


_VMEM_LIMIT = _get_vmem_limit()


def _row_tile(M, min_steps=2, cap=512):
    """Largest multiple-of-8 divisor of M (<= cap) that still yields >= min_steps blocks."""
    if M <= 8:
        return M
    divs = [d for d in range(8, min(M, cap) + 1, 8) if M % d == 0]
    if not divs:
        return min(M, cap)            # falls back to cdiv grid with a masked tail
    for d in sorted(divs, reverse=True):
        if M // d >= min_steps:
            return d
    return divs[0]


def _pick_col_block(W, W_sp):
    """Smallest multiple of W_sp that is a multiple of 8 and divides W (else full W)."""
    w = W_sp
    while w < W and (w % 8 != 0 or W % w != 0):
        w += W_sp
    return w if (w % 8 == 0 and W % w == 0) else W


# ----------------------------------------------------------------------------
# 1. qkv projection: X @ Wqkv + b  -> q/k/v, bf16, pre-split into branch halves
# ----------------------------------------------------------------------------

def qkv_kernel(x_ref, w_ref, b_ref, q_ref, k_ref, v_ref, *, C):
    Cb = C // 2
    y = (jnp.dot(x_ref[...], w_ref[...], preferred_element_type=jnp.float32)
         + b_ref[...]).astype(q_ref.dtype)
    q_ref[0] = y[:, 0:Cb]
    q_ref[1] = y[:, Cb:C]
    k_ref[0] = y[:, C:C + Cb]
    k_ref[1] = y[:, C + Cb:2 * C]
    v_ref[0] = y[:, 2 * C:2 * C + Cb]
    v_ref[1] = y[:, 2 * C + Cb:3 * C]


def pallas_qkv(x2d, w, b):
    M, C = x2d.shape
    Cb = C // 2
    tm = _row_tile(M, min_steps=4)
    kern = functools.partial(qkv_kernel, C=C)
    out_sd = jax.ShapeDtypeStruct((2, M, Cb), jnp.bfloat16)
    return pl.pallas_call(
        kern,
        out_shape=(out_sd, out_sd, out_sd),
        grid=(pl.cdiv(M, tm),),
        in_specs=[
            pl.BlockSpec((tm, C), lambda i: (i, 0)),
            pl.BlockSpec((C, 3 * C), lambda i: (0, 0)),
            pl.BlockSpec((1, 3 * C), lambda i: (0, 0)),
        ],
        out_specs=(
            pl.BlockSpec((2, tm, Cb), lambda i: (0, i, 0)),
            pl.BlockSpec((2, tm, Cb), lambda i: (0, i, 0)),
            pl.BlockSpec((2, tm, Cb), lambda i: (0, i, 0)),
        ),
        compiler_params=pltpu.CompilerParams(
            dimension_semantics=("parallel",), vmem_limit_bytes=_VMEM_LIMIT),
    )(x2d, w, b.reshape(1, 3 * C).astype(jnp.float32))


def ref_qkv(x2d, w, b, C):
    Cb = C // 2
    y = (jnp.dot(x2d, w, preferred_element_type=jnp.float32) + b).astype(jnp.bfloat16)

    def halves(z):
        return jnp.stack([z[:, :Cb], z[:, Cb:]], axis=0)

    return (halves(y[:, 0:C]), halves(y[:, C:2 * C]), halves(y[:, 2 * C:3 * C]))


# ----------------------------------------------------------------------------
# 2. Rectangular-window attention (window partition folded into the BlockSpec)
# ----------------------------------------------------------------------------

def attn_kernel(q_ref, k_ref, v_ref, bm_ref, o_ref, *, nh, hd, scale, H_sp, W_blk):
    Cb = nh * hd
    ntok = H_sp * W_blk
    q = q_ref[0, 0].reshape(ntok, Cb)                 # bf16 tokens of this block
    k = k_ref[0, 0].reshape(ntok, Cb)
    v = v_ref[0, 0].reshape(ntok, Cb)
    for h in range(nh):                               # tiny loop (num_heads // 2)
        lo = h * hd
        qh = q[:, lo:lo + hd]
        kh = k[:, lo:lo + hd]
        vh = v[:, lo:lo + hd]
        s = jnp.einsum('nd,md->nm', qh, kh,
                       preferred_element_type=jnp.float32) * scale
        s = s + bm_ref[h]                             # rel-pos bias + (-1e9) cross-window mask
        s = s - jnp.max(s, axis=-1, keepdims=True)
        p = jnp.exp(s)
        p = p * pl.reciprocal(jnp.sum(p, axis=-1, keepdims=True), approx=True)
        oh = jnp.einsum('nm,md->nd', p.astype(vh.dtype), vh,
                        preferred_element_type=jnp.float32)
        # direct per-head store into the output lane range (no lane concat)
        o_ref[0, :, :, lo:lo + hd] = oh.reshape(H_sp, W_blk, hd).astype(o_ref.dtype)


def pallas_branch_attention(qm, km, vm, bm, branch, H_sp, W_blk, nh, hd, scale):
    two, B, H, W, Cb = qm.shape
    ntok = H_sp * W_blk
    kern = functools.partial(attn_kernel, nh=nh, hd=hd, scale=float(scale),
                             H_sp=H_sp, W_blk=W_blk)
    in_spec = pl.BlockSpec((1, 1, H_sp, W_blk, Cb),
                           lambda b, hb, wb: (branch, b, hb, wb, 0))
    return pl.pallas_call(
        kern,
        out_shape=jax.ShapeDtypeStruct((B, H, W, Cb), jnp.bfloat16),
        grid=(B, H // H_sp, W // W_blk),
        in_specs=[in_spec, in_spec, in_spec,
                  pl.BlockSpec((nh, ntok, ntok), lambda b, hb, wb: (0, 0, 0))],
        out_specs=pl.BlockSpec((1, H_sp, W_blk, Cb), lambda b, hb, wb: (b, hb, wb, 0)),
        compiler_params=pltpu.CompilerParams(
            dimension_semantics=("parallel", "parallel", "parallel"),
            vmem_limit_bytes=_VMEM_LIMIT),
    )(qm, km, vm, bm)


def ref_branch_attention(qm, km, vm, bm, branch, H_sp, W_blk, nh, hd, scale):
    two, B, H, W, Cb = qm.shape
    ntok = H_sp * W_blk
    nbh, nbw = H // H_sp, W // W_blk

    def blk(x):
        x = x[branch].reshape(B, nbh, H_sp, nbw, W_blk, Cb)
        return x.transpose(0, 1, 3, 2, 4, 5).reshape(-1, ntok, Cb)

    q, k, v = blk(qm), blk(km), blk(vm)
    outs = []
    for h in range(nh):
        lo = h * hd
        qh, kh, vh = q[..., lo:lo + hd], k[..., lo:lo + hd], v[..., lo:lo + hd]
        s = jnp.einsum('bnd,bmd->bnm', qh, kh,
                       preferred_element_type=jnp.float32) * scale + bm[h][None]
        p = jax.nn.softmax(s, axis=-1)
        outs.append(jnp.einsum('bnm,bmd->bnd', p.astype(vh.dtype), vh,
                               preferred_element_type=jnp.float32))
    o = jnp.concatenate(outs, axis=-1)
    o = o.reshape(B, nbh, nbw, H_sp, W_blk, Cb).transpose(0, 1, 3, 2, 4, 5)
    return o.reshape(B, H, W, Cb).astype(jnp.bfloat16)


def build_bias_mask(pos_table, rel_idx, H_sp, W_sp, W_blk):
    """Relative-position bias per head, expanded to the kernel's (ntok x ntok) token block
    and combined with a -1e9 mask for cross-window token pairs."""
    N = H_sp * W_sp
    nh = pos_table.shape[-1]
    bias = pos_table[rel_idx.reshape(-1)].reshape(N, N, nh).transpose(2, 0, 1)  # (nh,N,N)
    ntok = H_sp * W_blk
    t = np.arange(ntok)
    h, w = t // W_blk, t % W_blk
    win = w // W_sp
    n = jnp.asarray(h * W_sp + (w % W_sp), jnp.int32)
    same = jnp.asarray(win[:, None] == win[None, :])
    bm = bias[:, n[:, None], n[None, :]]
    return jnp.where(same[None, :, :], bm, -1e9).astype(jnp.float32)


# ----------------------------------------------------------------------------
# 3. Depthwise 3x3 conv + BN(inference) + exact GELU (per channel-half)
# ----------------------------------------------------------------------------

def dwconv_kernel(v_ref, w_ref, b_ref, sc_ref, sh_ref, o_ref, *, H, W):
    x = v_ref[0, 0].astype(jnp.float32)              # (H, W, Cb)
    Cb = x.shape[-1]
    w = w_ref[0].astype(jnp.float32)                 # (9, Cb)

    def shift_rows(a, dh):                           # y[i] = a[i+dh], zero outside
        if dh == 0:
            return a
        z = jnp.zeros((1, W, Cb), jnp.float32)
        return (jnp.concatenate([a[1:], z], axis=0) if dh > 0
                else jnp.concatenate([z, a[:-1]], axis=0))

    def shift_cols(a, dw):                           # y[:, j] = a[:, j+dw], zero outside
        if dw == 0:
            return a
        z = jnp.zeros((H, 1, Cb), jnp.float32)
        return (jnp.concatenate([a[:, 1:], z], axis=1) if dw > 0
                else jnp.concatenate([z, a[:, :-1]], axis=1))

    rows = [shift_rows(x, dh) for dh in (-1, 0, 1)]  # 3 row shifts (leading dim, cheap)
    acc = jnp.zeros((H, W, Cb), jnp.float32)
    for dw in (-1, 0, 1):                            # only 3 column (sublane) shifts total
        t = jnp.zeros((H, W, Cb), jnp.float32)
        for dh in (-1, 0, 1):
            t = t + rows[dh + 1] * w[(dh + 1) * 3 + (dw + 1)][None, None, :]
        acc = acc + shift_cols(t, dw)
    y = acc + b_ref[...]
    y = y * sc_ref[...] + sh_ref[...]
    y = jax.nn.gelu(y, approximate=False)            # exact GELU (PyTorch default)
    o_ref[0, 0] = y.astype(o_ref.dtype)


def pallas_dwconv(vm, w_h, b_h, sc_h, sh_h):
    two, B, H, W, Cb = vm.shape
    kern = functools.partial(dwconv_kernel, H=H, W=W)
    return pl.pallas_call(
        kern,
        out_shape=jax.ShapeDtypeStruct((2, B, H, W, Cb), jnp.bfloat16),
        grid=(2, B),
        in_specs=[
            pl.BlockSpec((1, 1, H, W, Cb), lambda g, b: (g, b, 0, 0, 0)),
            pl.BlockSpec((1, 9, Cb), lambda g, b: (g, 0, 0)),
            pl.BlockSpec((1, 1, Cb), lambda g, b: (g, 0, 0)),
            pl.BlockSpec((1, 1, Cb), lambda g, b: (g, 0, 0)),
            pl.BlockSpec((1, 1, Cb), lambda g, b: (g, 0, 0)),
        ],
        out_specs=pl.BlockSpec((1, 1, H, W, Cb), lambda g, b: (g, b, 0, 0, 0)),
        compiler_params=pltpu.CompilerParams(
            dimension_semantics=("parallel", "parallel"),
            vmem_limit_bytes=_VMEM_LIMIT),
    )(vm, w_h, b_h, sc_h, sh_h)


def ref_dwconv(vm, w_h, b_h, sc_h, sh_h):
    two, B, H, W, Cb = vm.shape
    x = vm.astype(jnp.float32)
    xp = jnp.pad(x, ((0, 0), (0, 0), (1, 1), (1, 1), (0, 0)))
    acc = jnp.zeros_like(x)
    for kh in range(3):
        for kw in range(3):
            acc = acc + xp[:, :, kh:kh + H, kw:kw + W, :] * \
                w_h[:, kh * 3 + kw].reshape(2, 1, 1, 1, Cb)
    y = acc + b_h.reshape(2, 1, 1, 1, Cb)
    y = y * sc_h.reshape(2, 1, 1, 1, Cb) + sh_h.reshape(2, 1, 1, 1, Cb)
    return jax.nn.gelu(y, approximate=False).astype(jnp.bfloat16)


# ----------------------------------------------------------------------------
# 4. Fused: spatial-interaction tower + adaptive mixing + final projection
#    out = (a*sig(channel) + sig(spatial(a))*conv) @ W_proj + b_proj
# ----------------------------------------------------------------------------

def fuse_kernel(a0_ref, a1_ref, cv_ref, ch_ref, siw1_ref, sib1_ref, sisc_ref,
                sish_ref, siw2_ref, sib2_ref, pw_ref, pb_ref, o_ref):
    a = jnp.concatenate([a0_ref[0].astype(jnp.float32),
                         a1_ref[0].astype(jnp.float32)], axis=-1)       # (TL, C)
    cv = jnp.concatenate([cv_ref[0, 0].astype(jnp.float32),
                          cv_ref[1, 0].astype(jnp.float32)], axis=-1)   # (TL, C)
    # spatial interaction: 1x1 -> BN affine -> GELU -> 1x1 (fused, data already in VMEM)
    h = jnp.dot(a.astype(siw1_ref.dtype), siw1_ref[...],
                preferred_element_type=jnp.float32) + sib1_ref[...]
    h = jax.nn.gelu(h * sisc_ref[...] + sish_ref[...], approximate=False)
    sp = jnp.dot(h.astype(siw2_ref.dtype), siw2_ref[...],
                 preferred_element_type=jnp.float32) + sib2_ref[...]    # (TL, 1)
    fused = a * jax.nn.sigmoid(ch_ref[0]) + jax.nn.sigmoid(sp) * cv
    o_ref[0] = (jnp.dot(fused.astype(pw_ref.dtype), pw_ref[...],
                        preferred_element_type=jnp.float32)
                + pb_ref[...]).astype(o_ref.dtype)


def pallas_fuse(a0, a1, cv, ch, siw1, sib1, sisc, sish, siw2, sib2, pw, pb):
    B, L, Cb = a0.shape
    C = 2 * Cb
    C16 = siw1.shape[1]
    tl = _row_tile(L, min_steps=max(1, (8 + B - 1) // B))
    return pl.pallas_call(
        fuse_kernel,
        out_shape=jax.ShapeDtypeStruct((B, L, C), jnp.float32),
        grid=(B, pl.cdiv(L, tl)),
        in_specs=[
            pl.BlockSpec((1, tl, Cb), lambda b, l: (b, l, 0)),
            pl.BlockSpec((1, tl, Cb), lambda b, l: (b, l, 0)),
            pl.BlockSpec((2, 1, tl, Cb), lambda b, l: (0, b, l, 0)),
            pl.BlockSpec((1, 1, C), lambda b, l: (b, 0, 0)),
            pl.BlockSpec((C, C16), lambda b, l: (0, 0)),
            pl.BlockSpec((1, C16), lambda b, l: (0, 0)),
            pl.BlockSpec((1, C16), lambda b, l: (0, 0)),
            pl.BlockSpec((1, C16), lambda b, l: (0, 0)),
            pl.BlockSpec((C16, 1), lambda b, l: (0, 0)),
            pl.BlockSpec((1, 1), lambda b, l: (0, 0)),
            pl.BlockSpec((C, C), lambda b, l: (0, 0)),
            pl.BlockSpec((1, C), lambda b, l: (0, 0)),
        ],
        out_specs=pl.BlockSpec((1, tl, C), lambda b, l: (b, l, 0)),
        compiler_params=pltpu.CompilerParams(
            dimension_semantics=("parallel", "parallel"),
            vmem_limit_bytes=_VMEM_LIMIT),
    )(a0, a1, cv, ch.astype(jnp.float32),
      siw1.astype(jnp.bfloat16), sib1.reshape(1, C16).astype(jnp.float32),
      sisc.reshape(1, C16).astype(jnp.float32), sish.reshape(1, C16).astype(jnp.float32),
      siw2.astype(jnp.bfloat16), sib2.reshape(1, 1).astype(jnp.float32),
      pw.astype(jnp.bfloat16), pb.reshape(1, C).astype(jnp.float32))


def ref_fuse(a0, a1, cv, ch, siw1, sib1, sisc, sish, siw2, sib2, pw, pb):
    a = jnp.concatenate([a0.astype(jnp.float32), a1.astype(jnp.float32)], axis=-1)
    c = jnp.concatenate([cv[0].astype(jnp.float32), cv[1].astype(jnp.float32)], axis=-1)
    h = jnp.dot(a.astype(jnp.bfloat16), siw1.astype(jnp.bfloat16),
                preferred_element_type=jnp.float32) + sib1
    h = jax.nn.gelu(h * sisc + sish, approximate=False)
    sp = jnp.dot(h.astype(jnp.bfloat16), siw2.astype(jnp.bfloat16),
                 preferred_element_type=jnp.float32) + sib2
    fused = a * jax.nn.sigmoid(ch.astype(jnp.float32)) + jax.nn.sigmoid(sp) * c
    return jnp.dot(fused.astype(jnp.bfloat16), pw.astype(jnp.bfloat16),
                   preferred_element_type=jnp.float32) + pb


# ----------------------------------------------------------------------------
# Module glue (DynamicPosBias, rel-pos tables, parameter init, forward)
# ----------------------------------------------------------------------------

def layer_norm(x, g, b, eps=1e-5):
    mu = x.mean(-1, keepdims=True)
    var = ((x - mu) ** 2).mean(-1, keepdims=True)
    return (x - mu) / jnp.sqrt(var + eps) * g + b


def dyn_pos_bias(biases, p):
    # DynamicPosBias with residual=False: pos3(pos2(pos1(pos_proj(biases))))
    x = biases @ p['proj_w'] + p['proj_b']
    x = jnp.maximum(layer_norm(x, p['ln1_g'], p['ln1_b']), 0.0) @ p['w1'] + p['b1']
    x = jnp.maximum(layer_norm(x, p['ln2_g'], p['ln2_b']), 0.0) @ p['w2'] + p['b2']
    x = jnp.maximum(layer_norm(x, p['ln3_g'], p['ln3_b']), 0.0) @ p['w3'] + p['b3']
    return x  # (num_rel, nh_branch)


def rel_pos_tables(H_sp, W_sp):
    ph = np.arange(1 - H_sp, H_sp)
    pw = np.arange(1 - W_sp, W_sp)
    bh, bw = np.meshgrid(ph, pw, indexing='ij')
    biases = np.stack([bh, bw]).reshape(2, -1).T.astype(np.float32)   # (num_rel, 2)

    ch, cw = np.meshgrid(np.arange(H_sp), np.arange(W_sp), indexing='ij')
    coords = np.stack([ch, cw]).reshape(2, -1)                        # (2, N)
    rel = (coords[:, :, None] - coords[:, None, :]).transpose(1, 2, 0)
    rel[..., 0] += H_sp - 1
    rel[..., 1] += W_sp - 1
    rel[..., 0] *= 2 * W_sp - 1
    idx = rel.sum(-1).astype(np.int32)                                # (N, N)
    return jnp.asarray(biases), jnp.asarray(idx)


def adaptive_spatial_attention(x, H, W, p, cfg, use_pallas=True):
    """x: (B, H*W, C) float32 -> (B, H*W, C) float32."""
    B, L, C = x.shape
    assert L == H * W
    nh = cfg['num_heads']
    ss = cfg['split_size']
    assert (H % ss[0] == 0 and H % ss[1] == 0 and
            W % ss[0] == 0 and W % ss[1] == 0), "padding path not implemented"
    Cb = C // 2
    nh_b = nh // 2
    hd = Cb // nh_b
    scale = hd ** (-0.5)

    # ---- qkv projection: bf16, split into branch channel-halves, no transpose pass
    x_bf = x.reshape(B * L, C).astype(jnp.bfloat16)
    w_bf = p['qkv_w'].astype(jnp.bfloat16)
    if use_pallas:
        q2, k2, v2 = pallas_qkv(x_bf, w_bf, p['qkv_b'])
    else:
        q2, k2, v2 = ref_qkv(x_bf, w_bf, p['qkv_b'], C)
    qm = q2.reshape(2, B, H, W, Cb)
    km = k2.reshape(2, B, H, W, Cb)
    vm = v2.reshape(2, B, H, W, Cb)

    # ---- two rectangular-window attention branches (windowing folded into BlockSpecs)
    splits = [(ss[0], ss[1]), (ss[1], ss[0])]
    att_halves = []
    for i, (H_sp, W_sp) in enumerate(splits):
        W_blk = _pick_col_block(W, W_sp)
        pos_table = dyn_pos_bias(p[f'rpe_biases_{i}'], p[f'pos_{i}'])   # (num_rel, nh_b)
        bm = build_bias_mask(pos_table, p[f'rel_idx_{i}'], H_sp, W_sp, W_blk)
        if use_pallas:
            o = pallas_branch_attention(qm, km, vm, bm, i, H_sp, W_blk, nh_b, hd, scale)
        else:
            o = ref_branch_attention(qm, km, vm, bm, i, H_sp, W_blk, nh_b, hd, scale)
        att_halves.append(o.reshape(B, L, Cb))

    # ---- depthwise 3x3 conv + BN + GELU on the value map
    dw_scale = p['dw_bn_g'] / jnp.sqrt(p['dw_bn_rv'] + 1e-5)
    dw_shift = p['dw_bn_b'] - p['dw_bn_rm'] * dw_scale
    w9c = p['dw_w'].reshape(9, C)
    w_h = jnp.stack([w9c[:, :Cb], w9c[:, Cb:]], axis=0).astype(jnp.float32)   # (2,9,Cb)
    b_h = p['dw_b'].reshape(2, 1, Cb).astype(jnp.float32)
    sc_h = dw_scale.reshape(2, 1, Cb).astype(jnp.float32)
    sh_h = dw_shift.reshape(2, 1, Cb).astype(jnp.float32)
    conv = pallas_dwconv(vm, w_h, b_h, sc_h, sh_h) if use_pallas else \
        ref_dwconv(vm, w_h, b_h, sc_h, sh_h)
    conv = conv.reshape(2, B, L, Cb)

    # ---- channel interaction (only B rows): plain JAX — not worth a pallas_call
    pooled = conv.astype(jnp.float32).mean(axis=2).transpose(1, 0, 2).reshape(B, C)
    ci_scale = p['ci_bn_g'] / jnp.sqrt(p['ci_bn_rv'] + 1e-5)
    ci_shift = p['ci_bn_b'] - p['ci_bn_rm'] * ci_scale
    hc = jnp.dot(pooled, p['ci_w1']) + p['ci_b1']
    hc = jax.nn.gelu(hc * ci_scale + ci_shift, approximate=False)
    channel_logits = (jnp.dot(hc, p['ci_w2']) + p['ci_b2']).reshape(B, 1, C)

    # ---- fused spatial-interaction tower + adaptive mixing + final projection
    si_scale = p['si_bn_g'] / jnp.sqrt(p['si_bn_rv'] + 1e-5)
    si_shift = p['si_bn_b'] - p['si_bn_rm'] * si_scale
    fuse = pallas_fuse if use_pallas else ref_fuse
    out = fuse(att_halves[0], att_halves[1], conv, channel_logits,
               p['si_w1'], p['si_b1'], si_scale, si_shift,
               p['si_w2'], p['si_b2'], p['proj_w'], p['proj_b'])
    return out


def init_params(key, C, nh, split_size):
    keys = iter(jax.random.split(key, 128))

    def nrm(shape, s=0.1):
        return jax.random.normal(next(keys), shape, jnp.float32) * s

    p = {}
    p['qkv_w'] = nrm((C, 3 * C))
    p['qkv_b'] = nrm((3 * C,))
    p['proj_w'] = nrm((C, C))
    p['proj_b'] = nrm((C,))

    Cb = C // 2
    nh_b = nh // 2
    pd = Cb // 4
    for i in range(2):
        if i == 0:
            H_sp, W_sp = split_size[0], split_size[1]
        else:
            H_sp, W_sp = split_size[1], split_size[0]
        biases, rel_idx = rel_pos_tables(H_sp, W_sp)
        p[f'rpe_biases_{i}'] = biases
        p[f'rel_idx_{i}'] = rel_idx
        p[f'pos_{i}'] = {
            'proj_w': nrm((2, pd)), 'proj_b': nrm((pd,)),
            'ln1_g': jnp.ones((pd,), jnp.float32), 'ln1_b': jnp.zeros((pd,), jnp.float32),
            'w1': nrm((pd, pd)), 'b1': nrm((pd,)),
            'ln2_g': jnp.ones((pd,), jnp.float32), 'ln2_b': jnp.zeros((pd,), jnp.float32),
            'w2': nrm((pd, pd)), 'b2': nrm((pd,)),
            'ln3_g': jnp.ones((pd,), jnp.float32), 'ln3_b': jnp.zeros((pd,), jnp.float32),
            'w3': nrm((pd, nh_b)), 'b3': nrm((nh_b,)),
        }

    p['dw_w'] = nrm((3, 3, C))
    p['dw_b'] = nrm((C,))
    p['dw_bn_g'] = 1.0 + nrm((C,))
    p['dw_bn_b'] = nrm((C,))
    p['dw_bn_rm'] = nrm((C,))
    p['dw_bn_rv'] = jnp.abs(nrm((C,))) + 0.9

    c8, c16 = C // 8, C // 16
    p['ci_w1'] = nrm((C, c8)); p['ci_b1'] = nrm((c8,))
    p['ci_bn_g'] = 1.0 + nrm((c8,)); p['ci_bn_b'] = nrm((c8,))
    p['ci_bn_rm'] = nrm((c8,)); p['ci_bn_rv'] = jnp.abs(nrm((c8,))) + 0.9
    p['ci_w2'] = nrm((c8, C)); p['ci_b2'] = nrm((C,))

    p['si_w1'] = nrm((C, c16)); p['si_b1'] = nrm((c16,))
    p['si_bn_g'] = 1.0 + nrm((c16,)); p['si_bn_b'] = nrm((c16,))
    p['si_bn_rm'] = nrm((c16,)); p['si_bn_rv'] = jnp.abs(nrm((c16,))) + 0.9
    p['si_w2'] = nrm((c16, 1)); p['si_b2'] = nrm((1,))
    return p


if __name__ == "__main__":
    # Small but consistent configuration:
    #   dim=32, num_heads=4, H=W=8, split_size=[2,4] (rectangular windows, no padding)
    B, H, W, C = 2, 8, 8, 32
    cfg = {'num_heads': 4, 'split_size': [2, 4], 'shift_size': [1, 2]}

    key = jax.random.PRNGKey(0)
    k_x, k_p = jax.random.split(key)
    x = jax.random.normal(k_x, (B, H * W, C), jnp.float32)
    params = init_params(k_p, C, cfg['num_heads'], cfg['split_size'])

    out_pallas = adaptive_spatial_attention(x, H, W, params, cfg, use_pallas=True)
    out_pallas = jax.block_until_ready(out_pallas)

    # sanity check against a pure-JAX reference of the same math (same bf16-at-MXU casts;
    # approx-reciprocal softmax vs exact softmax is the only intentional divergence)
    out_ref = adaptive_spatial_attention(x, H, W, params, cfg, use_pallas=False)
    out_ref = jax.block_until_ready(out_ref)
    np.testing.assert_allclose(np.asarray(out_pallas), np.asarray(out_ref),
                               rtol=2e-2, atol=2e-2)

    print("KERNEL_OK")
</pallas_src>

<mosaic_0001>
module attributes {stable_mosaic.version = 11 : i64} {
  func.func @qkv_kernel(%arg0: i32, %arg1: memref<32x32xbf16, #tpu.memory_space<vmem>>, %arg2: memref<32x96xbf16, #tpu.memory_space<vmem>>, %arg3: memref<1x96xf32, #tpu.memory_space<vmem>>, %arg4: memref<2x32x16xbf16, #tpu.memory_space<vmem>>, %arg5: memref<2x32x16xbf16, #tpu.memory_space<vmem>>, %arg6: memref<2x32x16xbf16, #tpu.memory_space<vmem>>) attributes {dimension_semantics = [#tpu.dimension_semantics<parallel>], iteration_bounds = array<i64: 4>, scalar_prefetch = 0 : i64, scratch_operands = 0 : i64, tpu.core_type = #tpu.core_type<tc>, window_params = [{transform_indices = @transform_0, window_bounds = array<i64: 32, 32>}, {pipeline_mode = #tpu.pipeline_mode<synchronous>, transform_indices = @transform_1, window_bounds = array<i64: 32, 96>}, {pipeline_mode = #tpu.pipeline_mode<synchronous>, transform_indices = @transform_2, window_bounds = array<i64: 1, 96>}, {transform_indices = @transform_3, window_bounds = array<i64: 2, 32, 16>}, {transform_indices = @transform_4, window_bounds = array<i64: 2, 32, 16>}, {transform_indices = @transform_5, window_bounds = array<i64: 2, 32, 16>}]} {
    %c0 = arith.constant 0 : index
    %c0_0 = arith.constant 0 : index
    %0 = vector.load %arg1[%c0, %c0_0] : memref<32x32xbf16, #tpu.memory_space<vmem>>, vector<32x32xbf16>
    %c0_1 = arith.constant 0 : index
    %c0_2 = arith.constant 0 : index
    %1 = vector.load %arg2[%c0_1, %c0_2] : memref<32x96xbf16, #tpu.memory_space<vmem>>, vector<32x96xbf16>
    %cst = arith.constant dense<0.000000e+00> : vector<32x96xf32>
    %2 = tpu.matmul %0, %1, %cst {dimension_numbers = #tpu.dot_dimension_numbers<[1], [0], [0], [1], [0, 0, 1, 1], [], []>} : vector<32x32xbf16>, vector<32x96xbf16>, vector<32x96xf32> -> vector<32x96xf32>
    %c0_3 = arith.constant 0 : index
    %c0_4 = arith.constant 0 : index
    %3 = vector.load %arg3[%c0_3, %c0_4] : memref<1x96xf32, #tpu.memory_space<vmem>>, vector<1x96xf32>
    %4 = vector.broadcast %3 : vector<1x96xf32> to vector<32x96xf32>
    %5 = arith.addf %2, %4 : vector<32x96xf32>
    %6 = arith.truncf %5 : vector<32x96xf32> to vector<32x96xbf16>
    %7 = vector.extract_strided_slice %6 {offsets = [0, 0], sizes = [32, 16], strides = [1, 1]} : vector<32x96xbf16> to vector<32x16xbf16>
    %c0_5 = arith.constant 0 : index
    %c0_6 = arith.constant 0 : index
    %c0_7 = arith.constant 0 : index
    %8 = vector.load %arg4[%c0_5, %c0_6, %c0_7] : memref<2x32x16xbf16, #tpu.memory_space<vmem>>, vector<1x32x16xbf16>
    %9 = vector.shape_cast %8 : vector<1x32x16xbf16> to vector<32x16xbf16>
    %10 = vector.shape_cast %7 : vector<32x16xbf16> to vector<1x32x16xbf16>
    tpu.vector_store %arg4[%c0_5, %c0_6, %c0_7], %10 {strides = array<i32>} : memref<2x32x16xbf16, #tpu.memory_space<vmem>>, vector<1x32x16xbf16>,
    %11 = vector.extract_strided_slice %6 {offsets = [0, 16], sizes = [32, 16], strides = [1, 1]} : vector<32x96xbf16> to vector<32x16xbf16>
    %c1 = arith.constant 1 : index
    %c0_8 = arith.constant 0 : index
    %c0_9 = arith.constant 0 : index
    %12 = vector.load %arg4[%c1, %c0_8, %c0_9] : memref<2x32x16xbf16, #tpu.memory_space<vmem>>, vector<1x32x16xbf16>
    %13 = vector.shape_cast %12 : vector<1x32x16xbf16> to vector<32x16xbf16>
    %14 = vector.shape_cast %11 : vector<32x16xbf16> to vector<1x32x16xbf16>
    tpu.vector_store %arg4[%c1, %c0_8, %c0_9], %14 {strides = array<i32>} : memref<2x32x16xbf16, #tpu.memory_space<vmem>>, vector<1x32x16xbf16>,
    %15 = vector.extract_strided_slice %6 {offsets = [0, 32], sizes = [32, 16], strides = [1, 1]} : vector<32x96xbf16> to vector<32x16xbf16>
    %c0_10 = arith.constant 0 : index
    %c0_11 = arith.constant 0 : index
    %c0_12 = arith.constant 0 : index
    %16 = vector.load %arg5[%c0_10, %c0_11, %c0_12] : memref<2x32x16xbf16, #tpu.memory_space<vmem>>, vector<1x32x16xbf16>
    %17 = vector.shape_cast %16 : vector<1x32x16xbf16> to vector<32x16xbf16>
    %18 = vector.shape_cast %15 : vector<32x16xbf16> to vector<1x32x16xbf16>
    tpu.vector_store %arg5[%c0_10, %c0_11, %c0_12], %18 {strides = array<i32>} : memref<2x32x16xbf16, #tpu.memory_space<vmem>>, vector<1x32x16xbf16>,
    %19 = vector.extract_strided_slice %6 {offsets = [0, 48], sizes = [32, 16], strides = [1, 1]} : vector<32x96xbf16> to vector<32x16xbf16>
    %c1_13 = arith.constant 1 : index
    %c0_14 = arith.constant 0 : index
    %c0_15 = arith.constant 0 : index
    %20 = vector.load %arg5[%c1_13, %c0_14, %c0_15] : memref<2x32x16xbf16, #tpu.memory_space<vmem>>, vector<1x32x16xbf16>
    %21 = vector.shape_cast %20 : vector<1x32x16xbf16> to vector<32x16xbf16>
    %22 = vector.shape_cast %19 : vector<32x16xbf16> to vector<1x32x16xbf16>
    tpu.vector_store %arg5[%c1_13, %c0_14, %c0_15], %22 {strides = array<i32>} : memref<2x32x16xbf16, #tpu.memory_space<vmem>>, vector<1x32x16xbf16>,
    %23 = vector.extract_strided_slice %6 {offsets = [0, 64], sizes = [32, 16], strides = [1, 1]} : vector<32x96xbf16> to vector<32x16xbf16>
    %c0_16 = arith.constant 0 : index
    %c0_17 = arith.constant 0 : index
    %c0_18 = arith.constant 0 : index
    %24 = vector.load %arg6[%c0_16, %c0_17, %c0_18] : memref<2x32x16xbf16, #tpu.memory_space<vmem>>, vector<1x32x16xbf16>
    %25 = vector.shape_cast %24 : vector<1x32x16xbf16> to vector<32x16xbf16>
    %26 = vector.shape_cast %23 : vector<32x16xbf16> to vector<1x32x16xbf16>
    tpu.vector_store %arg6[%c0_16, %c0_17, %c0_18], %26 {strides = array<i32>} : memref<2x32x16xbf16, #tpu.memory_space<vmem>>, vector<1x32x16xbf16>,
    %27 = vector.extract_strided_slice %6 {offsets = [0, 80], sizes = [32, 16], strides = [1, 1]} : vector<32x96xbf16> to vector<32x16xbf16>
    %c1_19 = arith.constant 1 : index
    %c0_20 = arith.constant 0 : index
    %c0_21 = arith.constant 0 : index
    %28 = vector.load %arg6[%c1_19, %c0_20, %c0_21] : memref<2x32x16xbf16, #tpu.memory_space<vmem>>, vector<1x32x16xbf16>
    %29 = vector.shape_cast %28 : vector<1x32x16xbf16> to vector<32x16xbf16>
    %30 = vector.shape_cast %27 : vector<32x16xbf16> to vector<1x32x16xbf16>
    tpu.vector_store %arg6[%c1_19, %c0_20, %c0_21], %30 {strides = array<i32>} : memref<2x32x16xbf16, #tpu.memory_space<vmem>>, vector<1x32x16xbf16>,
    return
  }
  func.func @transform_0(%arg0: i32) -> (i32, i32) {
    %c0_i32 = arith.constant 0 : i32
    %c0_i32_0 = arith.constant 0 : i32
    return %arg0, %c0_i32 : i32, i32
  }
  func.func @transform_1(%arg0: i32) -> (i32, i32) {
    %c0_i32 = arith.constant 0 : i32
    %c0_i32_0 = arith.constant 0 : i32
    %c0_i32_1 = arith.constant 0 : i32
    return %c0_i32, %c0_i32_0 : i32, i32
  }
  func.func @transform_2(%arg0: i32) -> (i32, i32) {
    %c0_i32 = arith.constant 0 : i32
    %c0_i32_0 = arith.constant 0 : i32
    %c0_i32_1 = arith.constant 0 : i32
    return %c0_i32, %c0_i32_0 : i32, i32
  }
  func.func @transform_3(%arg0: i32) -> (i32, i32, i32) {
    %c0_i32 = arith.constant 0 : i32
    %c0_i32_0 = arith.constant 0 : i32
    %c0_i32_1 = arith.constant 0 : i32
    return %c0_i32, %arg0, %c0_i32_0 : i32, i32, i32
  }
  func.func @transform_4(%arg0: i32) -> (i32, i32, i32) {
    %c0_i32 = arith.constant 0 : i32
    %c0_i32_0 = arith.constant 0 : i32
    %c0_i32_1 = arith.constant 0 : i32
    return %c0_i32, %arg0, %c0_i32_0 : i32, i32, i32
  }
  func.func @transform_5(%arg0: i32) -> (i32, i32, i32) {
    %c0_i32 = arith.constant 0 : i32
    %c0_i32_0 = arith.constant 0 : i32
    %c0_i32_1 = arith.constant 0 : i32
    return %c0_i32, %arg0, %c0_i32_0 : i32, i32, i32
  }
}

</mosaic_0001>

<bundles_post_ra>
// kernel: tpu_custom_call.1
= control target key start
LH: loop header
LB: loop body
LE: loop exit
PB: predicated region body
PF: predicated region fallthrough
CT: control target
= control target key end

     0   :  { %11 = vsyncpa [#allocation3], 0  ;;  %s1503_s0 = inlined_call_operand.hbm [shape: bf16[128,32], index: 0, kind: input, shape index: {}]   ;;  %s1504_s1 = inlined_call_operand.hbm [shape: bf16[32,96], index: 1, kind: input, shape index: {}]   ;;  %s1505_s2 = inlined_call_operand.hbm [shape: f32[1,96], index: 2, kind: input, shape index: {}]   ;;  %s1506_s3 = inlined_call_operand.hbm [shape: bf16[2,128,16], index: 3, kind: output, shape index: {0}]   ;;  %s1507_s4 = inlined_call_operand.hbm [shape: bf16[2,128,16], index: 4, kind: output, shape index: {1}]   ;;  %s1508_s5 = inlined_call_operand.hbm [shape: bf16[2,128,16], index: 5, kind: output, shape index: {2}]  }
   0x1   :  { %13 = vsyncpa [#allocation3 + $0x1], 0 }
   0x2   :  { %14 = vsyncpa [#allocation6], 0 }
   0x3   :  { %15 = vsyncpa [#allocation4], 0 }
   0x4   :  { %17 = vsyncpa [#allocation4 + $0x1], 0 }
   0x5   :  { %18 = vsyncpa [#allocation10], 0 }
   0x6   :  { %20 = vsyncpa [#allocation10 + $0x1], 0  ;;  %s1171_s18 = smov 0   ;;  %s1173_s19 = smov 0  }
   0x7   :  { %s1175_s20 = smov 0   ;;  %s1177_s21 = smov 0  }
   0x8 LB: > { %s1192_s22 = sadd.s32 4294967295, %s1111_s21   ;;  %s786_s23 = sadd.s32 4294967294, %s1111_s21   ;;  %s1111_s21 = sphi %s1177_s21, %s1527_s21   ;;  %s1107_s20 = sphi %s1175_s20, %s1526_s20   ;;  %s1103_s19 = sphi %s1173_s19, %s1525_s19   ;;  %s1099_s18 = sphi %s1171_s18, %s1524_s18  }
   0x9   : > { %p46_p0 = scmp.ne.s32.totalorder %s1103_s19, %s1099_s18  ;;  %p1509_p1 = scmp.eq.s32.totalorder %s1192_s22, 0 }
   0xa   : > { %p118_p3 = scmp.eq.s32.totalorder %s786_s23, 3  ;;  %p787_p5 = scmp.ge.s32.totalorder %s1111_s21, 1 }
   0xb   : > { %p1203_p4 = por %p1509_p1, %p46_p0  ;;  %p177_p7 = scmp.lt.s32.totalorder %s1111_s21, 5 }
   0xc   : > { %p1208_p6 = por %p118_p3, %p46_p0  ;;  %s1113_s27 = smov [#allocation5]  }
   0xd   : > { %s1512_s24 = scalar_select %p1203_p4, 1, 0 }
   0xe   : > { %s1513_s25 = scalar_select %p1208_p6, 1, 0 }
   0xf   : > { %p1213_p8 = pnand %p787_p5, %p177_p7  ;;  %s189_s28 = sshll.u32 %s1113_s27, 4  ;;  %s190_s28 = int_to_ptr.vmem [resolvable:$true] %s189_s28 }
  0x10   : > { %s1114_s30 = smov [#allocation7]   ;;  %s979_s9 = scalar_lea.hbm %s1504_s1, 256 }
  0x11   : > { %s1514_s26 = scalar_select %p1213_p8, 1, 0 }
  0x12   : > { %p889_p9 = pneg %p1213_p8  ;;  %s203_s6 = sshll.u32 %s1114_s30, 4  ;;  %s1225_s6 = int_to_ptr.vmem [resolvable:$true] %s203_s6 }
  0x13   : > { %p980_p11 = scmp.ne.s32.totalorder %s1504_s1, %s979_s9  ;;  %p986_p3 = scmp.lt.u32.totalorder %s979_s9, %s1504_s1 }
  0x14   : > { %p1221_p10 = pnand %p889_p9, %p1509_p1 }
  0x16   : > { %p981_p12 = pneg %p1221_p10 }
  0x18   : > { %p982_p13 = pnand %p981_p12, %p980_p11 }
  0x1a   : > { %p983_p0 = pneg %p982_p13 }
  0x1c   : > { %p988_p5 = pnand %p986_p3, %p983_p0 }
  0x1e   : > { %991 = shalt.err (!%p988_p5)
}
  0x1f   : > { %s992_s14 = scalar_lea.vmem %s190_s28, 256  ;;  %p1000_p2 = scmp.lt.s32.totalorder %s190_s28, %s190_s28 }
  0x20   : > { %p993_p7 = scmp.ne.s32.totalorder %s190_s28, %s992_s14  ;;  %p1001_p6 = scmp.lt.s32.totalorder %s992_s14, %s992_s14 }
  0x22   : > { %p995_p9 = pnand %p993_p7, %p981_p12  ;;  %p1002_p4 = por %p1001_p6, %p1000_p2 }
  0x24   : > { %p996_p1 = pneg %p995_p9 }
  0x26   : > { %p1003_p8 = pnand %p1002_p4, %p996_p1 }
  0x28   : > { %1006 = shalt.err (!%p1003_p8)
}
  0x29   : > { %s1115_s15 = smov 64   ;;  %s1116_s16 = smov 4  }
  0x2a   : > { %892 = dma.hbm_to_vmem [thread:$0]  (!%p1221_p10), %s1504_s1, 256, %s190_s28, [#allocation6], %s1115_s15, %s1115_s15, %s1116_s16  }
  0x2b   : > { %s1007_s8 = scalar_lea.hbm %s1505_s2, 16 }
  0x2c   : > { %p1008_p1 = scmp.ne.s32.totalorder %s1505_s2, %s1007_s8  ;;  %p1014_p6 = scmp.lt.u32.totalorder %s1007_s8, %s1505_s2 }
  0x2e   : > { %p1010_p2 = pnand %p1008_p1, %p981_p12 }
  0x30   : > { %p1011_p4 = pneg %p1010_p2 }
  0x32   : > { %p1016_p8 = pnand %p1014_p6, %p1011_p4 }
  0x34   : > { %1019 = shalt.err (!%p1016_p8)
}
  0x35   : > { %s1020_s28 = scalar_lea.vmem %s1225_s6, 16  ;;  %s1027_s13 = scalar_lea.vmem %s1225_s6, 32 }
  0x36   : > { %p1021_p11 = scmp.ne.s32.totalorder %s1225_s6, %s1020_s28  ;;  %p1028_p3 = scmp.lt.s32.totalorder %s1225_s6, %s1225_s6 }
  0x37   : > { %p1029_p5 = scmp.lt.s32.totalorder %s1027_s13, %s1020_s28 }
  0x38   : > { %p1023_p13 = pnand %p1021_p11, %p981_p12 }
  0x39   : > { %p1030_p7 = por %p1029_p5, %p1028_p3 }
  0x3a   : > { %p1024_p0 = pneg %p1023_p13 }
  0x3c   : > { %p1031_p9 = pnand %p1030_p7, %p1024_p0 }
  0x3e   : > { %1034 = shalt.err (!%p1031_p9)
}
  0x3f   : > { %895 = dma.hbm_to_vmem [thread:$0]  (!%p1221_p10), %s1505_s2, 16, %s1225_s6, [#allocation6]  }
  0x40   : > { %s1279_s27 = sadd.s32 1, %s1111_s21   ;;  %s33_s29 = sadd.s32 1, %s1107_s20 }
  0x41   : > { %s30_s30 = ssub.s32 %s1111_s21, %s1279_s27  ;;  %p40_p12 = scmp.ne.s32.totalorder %s1107_s20, %s1103_s19 }
  0x42   : > { %p31_p1 = scmp.eq.s32.totalorder %s30_s30, 0  ;;  %p41_p2 = scmp.eq.s32.totalorder %s1111_s21, 0 }
  0x43   : > { %p1516_p4 = scmp.eq.s32.totalorder %s1192_s22, 3  ;;  %p912_p8 = scmp.lt.s32.totalorder %s1111_s21, 4 }
  0x44   : > { %s1295_s8 = scalar_select %p31_p1, %s1107_s20, %s33_s29  }
  0x45   : > { %p1289_p6 = por %p1516_p4, %p40_p12  ;;  %p42_p11 = por %p41_p2, %p40_p12 }
  0x46   : > { %s214_s9 = sand.u32 1, %s1107_s20   ;;  %s835_s6 = sshll.u32 %s1111_s21, 8 }
  0x47   : > { %s791_s10 = sshll.u32 %s214_s9, 4  ;;  %s1302_s28 = scalar_lea.hbm %s1503_s0, %s835_s6 }
  0x48   : > { %s218_s13 = scalar_lea.vmem [#allocation2], %s791_s10  ;;  %p1306_p10 = pnand %p912_p8, %p42_p11 }
  0x49   : > { %s225_s14 = sshll.u32 %s218_s13, 4  ;;  %s1310_s29 = scalar_lea.sflag [#allocation3], %s214_s9  ;;  %s1304_s14 = int_to_ptr.vmem [resolvable:$true] %s225_s14 }
  0x4a   : > { %s1035_s30 = scalar_lea.hbm %s1302_s28, 256  ;;  %p1037_p0 = pneg %p1306_p10 }
  0x4b   : > { %p1036_p13 = scmp.ne.s32.totalorder %s1302_s28, %s1035_s30  ;;  %s1040_s11 = scalar_lea.hbm %s1503_s0, 1024 }
  0x4c   : > { %p1041_p7 = scmp.lt.u32.totalorder %s1302_s28, %s1503_s0  ;;  %p1042_p9 = scmp.lt.u32.totalorder %s1040_s11, %s1035_s30 }
  0x4d   : > { %p1038_p3 = pnand %p1037_p0, %p1036_p13  ;;  %p1044_p1 = scmp.lt.u32.totalorder %s1035_s30, %s1302_s28 }
  0x4e   : > { %p1043_p12 = por %p1042_p9, %p1041_p7 }
  0x4f   : > { %p1039_p5 = pneg %p1038_p3 }
  0x50   : > { %p1045_p2 = por %p1044_p1, %p1043_p12 }
  0x52   : > { %p1046_p4 = pnand %p1045_p2, %p1039_p5 }
  0x54   : > { %1049 = shalt.err (!%p1046_p4)
}
  0x55   : > { %s1050_s9 = scalar_lea.vmem %s1304_s14, 256  ;;  %s1117_s10 = smov [#allocation2]  }
  0x56   : > { %p1051_p8 = scmp.ne.s32.totalorder %s1304_s14, %s1050_s9  ;;  %s1055_s6 = sshll.u32 %s1117_s10, 4  ;;  %s1056_s6 = int_to_ptr.vmem [resolvable:$false] %s1055_s6 }
  0x57   : > { %s1057_s12 = scalar_lea.vmem %s1056_s6, 512  ;;  %p1058_p3 = scmp.lt.s32.totalorder %s1304_s14, %s1056_s6 }
  0x58   : > { %p1053_p11 = pnand %p1051_p8, %p1037_p0  ;;  %p1059_p7 = scmp.lt.s32.totalorder %s1057_s12, %s1050_s9 }
  0x5a   : > { %p1054_p13 = pneg %p1053_p11  ;;  %p1060_p9 = por %p1059_p7, %p1058_p3 }
  0x5c   : > { %p1061_p12 = pnand %p1060_p9, %p1054_p13 }
  0x5e   : > { %1064 = shalt.err (!%p1061_p12)
}
  0x5f   : > { %899 = dma.hbm_to_vmem [thread:$0]  (!%p1306_p10), %s1302_s28, 256, %s1304_s14, %s1310_s29, %s1115_s15, %s1115_s15, %s1116_s16  }
  0x60   : > { %p1519_p0 = scmp.ne.s32.totalorder %s1514_s26, 0 }
  0x61   : > { %s1344_s30 = sand.u32 (!%p1519_p0), 1, %s1103_s19   ;;  %p1520_p5 = scmp.ne.s32.totalorder (!%p1519_p0), %s1512_s24, 0 }
  0x62   : > { %237 = sbr.rel (%p1519_p0) target bundleno = 513 (0x201), region = 32  ;;  %s795_s11 = sshll.u32 (!%p1519_p0), %s1344_s30, 4 }
  0x63   : > { %s240_s13 = scalar_lea.sflag (!%p1519_p0), [#allocation3], %s1344_s30  ;;  %s243_s9 = scalar_lea.vmem (!%p1519_p0), [#allocation2], %s795_s11 }
  0x69   : > { %1082 = dma.done.wait (%p1520_p5), %s240_s13, 256  }
  0x6a   : > { %1084 = vsyncadd (%p1520_p5), %s240_s13, 4294967040  ;;  %p1521_p1 = scmp.eq.s32.totalorder %s1192_s22, 0 }
  0x6c   : > { %1086 = dma.done.wait (%p1521_p1), [#allocation6], 272   ;;  %p1522_p10 = pmov %p1521_p1 }
  0x6d   : > { %v975_v0 = vld [vmem:[#allocation5] sm:$0xff]   ;;  %v976_v1 = vld [vmem:[#allocation5 + $0x8] sm:$0xff]   ;;  %vm330_vm0 = vcmask 261120   ;;  %s1357_s24 = sshll.u32 %s1344_s30, 5  ;;  %v801_v4 = vld [vmem:[#allocation7] ss:$0 sm:$0xff] }
  0x6e   : > { %1088 = vsyncadd (%p1522_p10), [#allocation6], 4294967024  ;;  %847 = vmatprep.subr.bf16.mxu0 %v975_v0  ;;  %v977_v2 = vld [vmem:[%s243_s9] sm:$0xff]   ;;  %v978_v3 = vld [vmem:[%s243_s9 + $0x8] sm:$0xff]   ;;  %vm402_vm1 = vcmask 125952   ;;  %s1360_s26 = scalar_lea.vmem [#allocation8], %s1357_s24 }
  0x6f   : > { %848 = vmatpush3.bf16.msra.mxu0 %v975_v0  ;;  %851 = vmatprep.mubr.msk.bf16.mxu0 %vm330_vm0, %v977_v2  ;;  %s1118_s15 = smov 96   ;;  %s1119_s16 = smov 112  }
  0x70   : > { %849 = vmatprep.subr.bf16.mxu0 %v976_v1  ;;  %s1120_s28 = smov 80   ;;  %s1121_s14 = smov 64  }
  0x71   : > { %s495_s17 = sand.u32 1, %s1192_s22   ;;  %s1122_s29 = smov 48  }
  0x72   : > { %s1372_s10 = scalar_lea.vmem [#allocation9], %s1357_s24  ;;  %s1383_s6 = scalar_lea.vmem [#allocation11], %s1357_s24 }
  0x73   : > { %850 = vmatpush3.bf16.msra.mxu0 %v976_v1  ;;  %s491_s12 = scalar_lea.sflag [#allocation4], %s1344_s30  ;;  %s1420_s11 = scalar_lea.sflag [#allocation10], %s495_s17 }
  0x76   : > { %852 = vmatmul.mubr.msk.bf16.vlgmr.msra.gmra.mrb[0].mxu0 %vm330_vm0, %v978_v3 }
 0x149   : > { %v853_v5 = vpop.f32.mrb[0].mxu0 }
 0x14a   : > { %v380_v6 = vadd.f32 %v853_v5, %v801_v4  ;;  %v371_v7 = vpop.f32.mrb[1].mxu0 }
 0x14b   : > { %v372_v8 = vadd.f32 %v801_v4, %v371_v7  ;;  %v854_v9 = vpop.f32.mrb[2].mxu0 }
 0x14c   : > { %v838_v10 = vpack.c.bf16 %v380_v6, %v380_v6  ;;  %v383_v11 = vadd.f32 %v854_v9, %v801_v4  ;;  %v374_v12 = vpop.f32.mrb[3].mxu0 }
 0x14d   : > { %v836_v13 = vpack.c.bf16 %v372_v8, %v372_v8  ;;  %v375_v14 = vadd.f32 %v801_v4, %v374_v12 }
 0x14e   : > { %405 = vst.msk [vmem:[%s1360_s26 + $0x8] sm:$0xf] %vm402_vm1, %v838_v10  ;;  %v839_v15 = vpack.c.bf16 %v383_v11, %v383_v11  ;;  %428 = vrot.lane.b32.xlu0 %v838_v10, %s1118_s15  ;;  %411 = vrot.lane.b32.xlu1 %v838_v10, %s1119_s16 }
 0x14f   : > { %403 = vst.msk [vmem:[%s1360_s26] sm:$0xf] %vm402_vm1, %v836_v13  ;;  %v837_v16 = vpack.c.bf16 %v375_v14, %v375_v14 }
 0x150   : > { %406 = vst.msk [vmem:[%s1360_s26 + $0xc] sm:$0xf] %vm402_vm1, %v839_v15 }
 0x151   : > { %404 = vst.msk [vmem:[%s1360_s26 + $0x4] sm:$0xf] %vm402_vm1, %v837_v16 }
 0x152   : > { %444 = vrot.lane.b32.xlu0 %v838_v10, %s1120_s28  ;;  %413 = vrot.lane.b32.xlu1 %v839_v15, %s1119_s16 }
 0x156   : > { %461 = vrot.lane.b32.xlu0 %v838_v10, %s1121_s14  ;;  %430 = vrot.lane.b32.xlu1 %v839_v15, %s1118_s15 }
 0x15a   : > { %446 = vrot.lane.b32.xlu1 %v839_v15, %s1120_s28  ;;  %407 = vrot.lane.b32.xlu0 %v836_v13, %s1119_s16 }
 0x15e   : > { %463 = vrot.lane.b32.xlu1 %v839_v15, %s1121_s14  ;;  %424 = vrot.lane.b32.xlu0 %v836_v13, %s1118_s15 }
 0x162   : > { %426 = vrot.lane.b32.xlu1 %v837_v16, %s1118_s15  ;;  %440 = vrot.lane.b32.xlu0 %v836_v13, %s1120_s28 }
 0x166   : > { %442 = vrot.lane.b32.xlu1 %v837_v16, %s1120_s28  ;;  %457 = vrot.lane.b32.xlu0 %v836_v13, %s1121_s14 }
 0x16a   : > { %459 = vrot.lane.b32.xlu1 %v837_v16, %s1121_s14  ;;  %473 = vrot.lane.b32.xlu0 %v836_v13, %s1122_s29 }
 0x16e   : > { %475 = vrot.lane.b32.xlu1 %v837_v16, %s1122_s29  ;;  %409 = vrot.lane.b32.xlu0 %v837_v16, %s1119_s16 }
 0x172   : > { %479 = vrot.lane.b32.xlu1 %v839_v15, %s1122_s29  ;;  %477 = vrot.lane.b32.xlu0 %v838_v10, %s1122_s29 }
 0x1c0   : > { %v429_v17 = vpop.permute.xlu0 %428  ;;  %v412_v18 = vpop.permute.xlu1 %411 }
 0x1c1   : > { %438 = vst.msk [vmem:[%s1372_s10 + $0x8] sm:$0xf] %vm402_vm1, %v429_v17  ;;  %814 = vst.msk [vmem:[%s1360_s26 + $0x18] sm:$0xf] %vm402_vm1, %v412_v18 }
 0x1c4   : > { %v445_v19 = vpop.permute.xlu0 %444  ;;  %v414_v20 = vpop.permute.xlu1 %413 }
 0x1c5   : > { %818 = vst.msk [vmem:[%s1372_s10 + $0x18] sm:$0xf] %vm402_vm1, %v445_v19  ;;  %815 = vst.msk [vmem:[%s1360_s26 + $0x1c] sm:$0xf] %vm402_vm1, %v414_v20 }
 0x1c8   : > { %v462_v21 = vpop.permute.xlu0 %461  ;;  %v431_v22 = vpop.permute.xlu1 %430 }
 0x1c9   : > { %471 = vst.msk [vmem:[%s1383_s6 + $0x8] sm:$0xf] %vm402_vm1, %v462_v21  ;;  %439 = vst.msk [vmem:[%s1372_s10 + $0xc] sm:$0xf] %vm402_vm1, %v431_v22 }
 0x1cc   : > { %v447_v23 = vpop.permute.xlu1 %446  ;;  %v408_v24 = vpop.permute.xlu0 %407 }
 0x1cd   : > { %819 = vst.msk [vmem:[%s1372_s10 + $0x1c] sm:$0xf] %vm402_vm1, %v447_v23  ;;  %812 = vst.msk [vmem:[%s1360_s26 + $0x10] sm:$0xf] %vm402_vm1, %v408_v24 }
 0x1d0   : > { %v464_v25 = vpop.permute.xlu1 %463  ;;  %v425_v26 = vpop.permute.xlu0 %424 }
 0x1d1   : > { %472 = vst.msk [vmem:[%s1383_s6 + $0xc] sm:$0xf] %vm402_vm1, %v464_v25  ;;  %436 = vst.msk [vmem:[%s1372_s10] sm:$0xf] %vm402_vm1, %v425_v26 }
 0x1d4   : > { %v427_v27 = vpop.permute.xlu1 %426  ;;  %v441_v28 = vpop.permute.xlu0 %440 }
 0x1d5   : > { %437 = vst.msk [vmem:[%s1372_s10 + $0x4] sm:$0xf] %vm402_vm1, %v427_v27  ;;  %816 = vst.msk [vmem:[%s1372_s10 + $0x10] sm:$0xf] %vm402_vm1, %v441_v28 }
 0x1d8   : > { %v443_v29 = vpop.permute.xlu1 %442  ;;  %v458_v30 = vpop.permute.xlu0 %457 }
 0x1d9   : > { %817 = vst.msk [vmem:[%s1372_s10 + $0x14] sm:$0xf] %vm402_vm1, %v443_v29  ;;  %469 = vst.msk [vmem:[%s1383_s6] sm:$0xf] %vm402_vm1, %v458_v30 }
 0x1dc   : > { %v460_v31 = vpop.permute.xlu1 %459  ;;  %v474_v32 = vpop.permute.xlu0 %473 }
 0x1dd   : > { %470 = vst.msk [vmem:[%s1383_s6 + $0x4] sm:$0xf] %vm402_vm1, %v460_v31  ;;  %820 = vst.msk [vmem:[%s1383_s6 + $0x10] sm:$0xf] %vm402_vm1, %v474_v32 }
 0x1e0   : > { %v476_v33 = vpop.permute.xlu1 %475  ;;  %v410_v34 = vpop.permute.xlu0 %409 }
 0x1e1   : > { %821 = vst.msk [vmem:[%s1383_s6 + $0x14] sm:$0xf] %vm402_vm1, %v476_v33  ;;  %813 = vst.msk [vmem:[%s1360_s26 + $0x14] sm:$0xf] %vm402_vm1, %v410_v34 }
 0x1e4   : > { %v480_v35 = vpop.permute.xlu1 %479  ;;  %v478_v36 = vpop.permute.xlu0 %477 }
 0x1e5   : > { %823 = vst.msk [vmem:[%s1383_s6 + $0x1c] sm:$0xf] %vm402_vm1, %v480_v35  ;;  %822 = vst.msk [vmem:[%s1383_s6 + $0x18] sm:$0xf] %vm402_vm1, %v478_v36 }
 0x1e6   : > { %s1423_s13 = sshll.u32 %s1192_s22, 8  ;;  %s530_s9 = sshll.u32 %s1360_s26, 4  ;;  %s531_s9 = int_to_ptr.vmem [resolvable:$true] %s530_s9 }
 0x1e7   : > { %s513_s30 = scalar_lea.hbm %s1506_s3, %s1423_s13  ;;  %s1123_s16 = smov 256  }
 0x1e8   : > { %865 = sst [smem:[#allocation13]] (%p1289_p6), %s1123_s16  ;;  %s1124_s28 = smov 1024  }
 0x1e9   : > { %866 = sst [smem:[#allocation13 + $0x1]] (%p1289_p6), %s1124_s28  ;;  %s1125_s14 = smov 4  }
 0x1ea   : > { %867 = sst [smem:[#allocation13 + $0x2]] (%p1289_p6), %s1125_s14  ;;  %s1126_s17 = smov 64  }
 0x1eb   : > { %868 = sst [smem:[#allocation13 + $0x3]] (%p1289_p6), %s1126_s17  ;;  %s1127_s22 = smov [#allocation12]  }
 0x1ec   : > { %869 = sst [smem:[#allocation13 + $0x4]] (%p1289_p6), %s1126_s17  ;;  %s1128_s26 = smov 0  }
 0x1ed   : > { %870 = sst [smem:[#allocation13 + $0x5]] (%p1289_p6), %s1125_s14 }
 0x1ee   : > { %871 = dma.general (%p1289_p6), %s531_s9, 512, %s513_s30, %s491_s12, %s1127_s22, [#allocation13], %s1128_s26, 0  }
 0x1ef   : > { %s558_s15 = scalar_lea.hbm %s1507_s4, %s1423_s13  ;;  %s575_s16 = sshll.u32 %s1372_s10, 4  ;;  %s576_s16 = int_to_ptr.vmem [resolvable:$true] %s575_s16 }
 0x1f0   : > { %s1129_s28 = smov 256   ;;  %s1130_s12 = smov 1024  }
 0x1f1   : > { %872 = sst [smem:[#allocation15]] (%p1289_p6), %s1129_s28  ;;  %s1131_s9 = smov 4  }
 0x1f2   : > { %873 = sst [smem:[#allocation15 + $0x1]] (%p1289_p6), %s1130_s12  ;;  %s1132_s30 = smov 64  }
 0x1f3   : > { %874 = sst [smem:[#allocation15 + $0x2]] (%p1289_p6), %s1131_s9  ;;  %s1133_s14 = smov [#allocation14]  }
 0x1f4   : > { %875 = sst [smem:[#allocation15 + $0x3]] (%p1289_p6), %s1132_s30  ;;  %s1134_s17 = smov 0  }
 0x1f5   : > { %876 = sst [smem:[#allocation15 + $0x4]] (%p1289_p6), %s1132_s30 }
 0x1f6   : > { %877 = sst [smem:[#allocation15 + $0x5]] (%p1289_p6), %s1131_s9 }
 0x1f7   : > { %878 = dma.general (%p1289_p6), %s576_s16, 512, %s558_s15, %s1420_s11, %s1133_s14, [#allocation15], %s1134_s17, 0  }
 0x1f8   : > { %s603_s26 = scalar_lea.hbm %s1508_s5, %s1423_s13  ;;  %s620_s29 = sshll.u32 %s1383_s6, 4  ;;  %s621_s29 = int_to_ptr.vmem [resolvable:$true] %s620_s29 }
 0x1f9   : > { %s1135_s24 = smov 256   ;;  %s1136_s15 = smov 1024  }
 0x1fa   : > { %879 = sst [smem:[#allocation17]] (%p1289_p6), %s1135_s24  ;;  %s1137_s16 = smov 4  }
 0x1fb   : > { %880 = sst [smem:[#allocation17 + $0x1]] (%p1289_p6), %s1136_s15  ;;  %s1138_s28 = smov 64  }
 0x1fc   : > { %881 = sst [smem:[#allocation17 + $0x2]] (%p1289_p6), %s1137_s16  ;;  %s1139_s12 = smov [#allocation16]  }
 0x1fd   : > { %882 = sst [smem:[#allocation17 + $0x3]] (%p1289_p6), %s1138_s28  ;;  %s1140_s13 = smov 0  }
 0x1fe   : > { %883 = sst [smem:[#allocation17 + $0x4]] (%p1289_p6), %s1138_s28 }
 0x1ff   : > { %884 = sst [smem:[#allocation17 + $0x5]] (%p1289_p6), %s1137_s16 }
 0x200   : > { %885 = dma.general (%p1289_p6), %s621_s29, 512, %s603_s26, %s1420_s11, %s1139_s12, [#allocation17], %s1140_s13, 0  }
 0x201 PF: > { %p915_p2 = scmp.ge.s32.totalorder %s1111_s21, 2  ;;  %s648_s6 = sand.u32 1, %s1099_s18  }
 0x202   : > { %p1523_p4 = scmp.ne.s32.totalorder %s1513_s25, 0  ;;  %s649_s9 = scalar_lea.sflag [#allocation4], %s648_s6 }
 0x204   : > { %p901_p8 = pnand %p915_p2, %p1523_p4 }
 0x206   : > { %1090 = dma.done.wait (!%p901_p8), %s649_s9, 512  }
 0x207   : > { %1092 = vsyncadd (!%p901_p8), %s649_s9, 4294966784  ;;  %s657_s30 = sand.u32 1, %s786_s23  }
 0x208   : > { %s658_s14 = scalar_lea.sflag [#allocation10], %s657_s30 }
 0x209   : > { %1094 = dma.done.wait (!%p901_p8), %s658_s14, 1024  }
 0x20a   : > { %1096 = vsyncadd (!%p901_p8), %s658_s14, 4294966272  ;;  %p23_p6 = scmp.ge.s32.totalorder %s1279_s27, 6   ;;  %s1524_s18 = smov %s1103_s19 }
 0x20b   : > { %s1525_s19 = smov %s1107_s20  ;;  %s1526_s20 = smov %s1295_s8 }
 0x20c   : > { %s1527_s21 = smov %s1279_s27  ;;  %25 = sbr.rel (!%p23_p6) target bundleno = 8 (0x8), region = 135 }
 0x213   :  { %672 = vsyncpa [#allocation3], 1 }
 0x214   :  { %674 = vsyncpa [#allocation3 + $0x1], 1 }
 0x215   :  { %675 = vsyncpa [#allocation6], 1 }
 0x216   :  { %676 = vsyncpa [#allocation4], 1 }
 0x217   :  { %678 = vsyncpa [#allocation4 + $0x1], 1 }
 0x218   :  { %679 = vsyncpa [#allocation10], 1 }
 0x219   :  { %681 = vsyncpa [#allocation10 + $0x1], 1 }

</bundles_post_ra>
